<compile_context>
chip_gen: v6e
topology: v6e:2x2x1
jax: 0.10.0
libtpu: 0.0.40
codegen_flags: <defaults>
</compile_context>

<pallas_src>
import functools
import math

import jax
import jax.numpy as jnp
from jax.experimental import pallas as pl
from jax.experimental.pallas import tpu as pltpu

LANE = 128      # TPU vreg lane width
SUBLANE = 8     # TPU vreg sublane count (f32)


def _round_up(n, m):
    return ((n + m - 1) // m) * m


def make_pe_table(d_model, max_len=1000, dtype=jnp.float32):
    """Sinusoidal table identical to the PyTorch module's register_buffer."""
    position = jnp.arange(max_len, dtype=jnp.float32)[:, None]               # (L, 1)
    div_term = jnp.exp(jnp.arange(0, d_model, 2, dtype=jnp.float32)
                       * (-math.log(10000.0) / d_model))                     # (D/2,)
    angles = position * div_term                                             # (L, D/2)
    pe = jnp.zeros((max_len, d_model), jnp.float32)
    pe = pe.at[:, 0::2].set(jnp.sin(angles))
    pe = pe.at[:, 1::2].set(jnp.cos(angles))
    return pe.astype(dtype)


# ----------------------------------------------------------------- kernel ---
def _pe_add_kernel(x_ref, pe_ref, o_ref):
    # x_ref/o_ref: (TB, TS, Dp) lane-dense block; pe_ref: (TS, Dp) broadcast
    # over the batch tile.  Pure VPU add, full-width unmasked loads/stores.
    o_ref[...] = x_ref[...] + pe_ref[...]


# ---------------------------------------------------------------- wrapper ---
@functools.partial(jax.jit, static_argnames=("seq_tile", "vmem_target_bytes"))
def positional_encoding_forward(x, pe, *, seq_tile=512,
                                vmem_target_bytes=2 << 20):
    """out = x + pe[:x.shape[1], :]   (PositionalEncoding.forward).

    x:  (B, S, D)   token activations
    pe: (max_len, D) precomputed sinusoidal table (module buffer)
    """
    B, S, D = x.shape
    L, Dpe = pe.shape
    assert Dpe == D and L >= S, "pe table incompatible with x"
    dtype = x.dtype
    itemsize = jnp.dtype(dtype).itemsize

    pe_s = pe[:S].astype(dtype)                                   # (S, D)

    # Lane / sublane dense padded shapes (feedback: avoid masked partial
    # loads/stores and per-op tail masking).
    Dp = _round_up(D, LANE)
    ts = min(_round_up(S, SUBLANE), _round_up(seq_tile, SUBLANE))
    Sp = _round_up(S, ts)
    # Batch rows per grid step sized so the x block is ~vmem_target_bytes
    # (biggest tile that fits; amortizes per-step overhead).
    tb = max(1, min(B, vmem_target_bytes // (ts * Dp * itemsize)))
    Bp = _round_up(B, tb)

    xp = x
    if (Bp, Sp, Dp) != (B, S, D):
        xp = jnp.pad(x, ((0, Bp - B), (0, Sp - S), (0, Dp - D)))
    pep = pe_s
    if (Sp, Dp) != (S, D):
        pep = jnp.pad(pe_s, ((0, Sp - S), (0, Dp - D)))

    # Grid ordered (seq-tile, batch-tile): the pe block index is constant
    # across the inner (batch) loop, so it is DMA'd once per sequence tile.
    grid = (Sp // ts, Bp // tb)

    out = pl.pallas_call(
        _pe_add_kernel,
        out_shape=jax.ShapeDtypeStruct((Bp, Sp, Dp), dtype),
        grid_spec=pltpu.PrefetchScalarGridSpec(
            num_scalar_prefetch=0,
            grid=grid,
            in_specs=[
                pl.BlockSpec((tb, ts, Dp), lambda s, b: (b, s, 0)),
                pl.BlockSpec((ts, Dp), lambda s, b: (s, 0)),
            ],
            out_specs=pl.BlockSpec((tb, ts, Dp), lambda s, b: (b, s, 0)),
        ),
        compiler_params=pltpu.CompilerParams(
            dimension_semantics=("parallel", "parallel")),
    )(xp, pep)

    if (Bp, Sp, Dp) != (B, S, D):
        out = out[:B, :S, :D]
    return out


# ------------------------------------------------------------------- main ---
if __name__ == "__main__":
    key = jax.random.PRNGKey(0)
    D_MODEL = 128
    MAX_LEN = 1000
    pe = make_pe_table(D_MODEL, MAX_LEN)

    # Case 1: shapes implied by the surrounding transformer
    # (seq = 65 tokens = cls + 64 patches, d_model = 128).  S=65 exercises the
    # sublane-padding path (65 -> 72).
    k1, k2 = jax.random.split(key)
    x1 = jax.random.normal(k1, (4, 65, D_MODEL), jnp.float32)
    out1 = jax.block_until_ready(positional_encoding_forward(x1, pe))
    assert out1.shape == x1.shape
    ref1 = x1 + pe[:65][None, :, :]
    err1 = float(jnp.max(jnp.abs(out1 - ref1)))
    assert err1 <= 1e-6, f"case1 mismatch vs reference: {err1}"

    # Case 2: larger batch / long sequence, exercises both grid axes
    # (seq tiles of 512 and batch tiles of 8).
    x2 = jax.random.normal(k2, (16, MAX_LEN, D_MODEL), jnp.float32)
    out2 = jax.block_until_ready(positional_encoding_forward(x2, pe))
    assert out2.shape == x2.shape
    ref2 = x2 + pe[None, :, :]
    err2 = float(jnp.max(jnp.abs(out2 - ref2)))
    assert err2 <= 1e-6, f"case2 mismatch vs reference: {err2}"

    print("KERNEL_OK")
</pallas_src>

<mosaic_0001>
module attributes {stable_mosaic.version = 11 : i64} {
  func.func @_pe_add_kernel(%arg0: i32, %arg1: i32, %arg2: memref<4x72x128xf32, #tpu.memory_space<vmem>>, %arg3: memref<72x128xf32, #tpu.memory_space<vmem>>, %arg4: memref<4x72x128xf32, #tpu.memory_space<vmem>>) attributes {dimension_semantics = [#tpu.dimension_semantics<parallel>, #tpu.dimension_semantics<parallel>], iteration_bounds = array<i64: 1, 1>, scalar_prefetch = 0 : i64, scratch_operands = 0 : i64, tpu.core_type = #tpu.core_type<tc>, window_params = [{transform_indices = @transform_0, window_bounds = array<i64: 4, 72, 128>}, {transform_indices = @transform_1, window_bounds = array<i64: 72, 128>}, {transform_indices = @transform_2, window_bounds = array<i64: 4, 72, 128>}]} {
    %c0 = arith.constant 0 : index
    %c0_0 = arith.constant 0 : index
    %c0_1 = arith.constant 0 : index
    %0 = vector.load %arg2[%c0, %c0_0, %c0_1] : memref<4x72x128xf32, #tpu.memory_space<vmem>>, vector<4x72x128xf32>
    %c0_2 = arith.constant 0 : index
    %c0_3 = arith.constant 0 : index
    %1 = vector.load %arg3[%c0_2, %c0_3] : memref<72x128xf32, #tpu.memory_space<vmem>>, vector<72x128xf32>
    %2 = vector.shape_cast %1 : vector<72x128xf32> to vector<1x72x128xf32>
    %3 = vector.broadcast %2 : vector<1x72x128xf32> to vector<4x72x128xf32>
    %4 = arith.addf %0, %3 : vector<4x72x128xf32>
    %c0_4 = arith.constant 0 : index
    %c0_5 = arith.constant 0 : index
    %c0_6 = arith.constant 0 : index
    %5 = vector.load %arg4[%c0_4, %c0_5, %c0_6] : memref<4x72x128xf32, #tpu.memory_space<vmem>>, vector<4x72x128xf32>
    tpu.vector_store %arg4[%c0_4, %c0_5, %c0_6], %4 {strides = array<i32>} : memref<4x72x128xf32, #tpu.memory_space<vmem>>, vector<4x72x128xf32>,
    return
  }
  func.func @transform_0(%arg0: i32, %arg1: i32) -> (i32, i32, i32) {
    %c0_i32 = arith.constant 0 : i32
    %c0_i32_0 = arith.constant 0 : i32
    return %arg1, %arg0, %c0_i32 : i32, i32, i32
  }
  func.func @transform_1(%arg0: i32, %arg1: i32) -> (i32, i32) {
    %c0_i32 = arith.constant 0 : i32
    %c0_i32_0 = arith.constant 0 : i32
    return %arg0, %c0_i32 : i32, i32
  }
  func.func @transform_2(%arg0: i32, %arg1: i32) -> (i32, i32, i32) {
    %c0_i32 = arith.constant 0 : i32
    %c0_i32_0 = arith.constant 0 : i32
    return %arg1, %arg0, %c0_i32 : i32, i32, i32
  }
}

</mosaic_0001>

<bundles_post_ra>
// kernel: positional_encoding_forward.1
= control target key start
LH: loop header
LB: loop body
LE: loop exit
PB: predicated region body
PF: predicated region fallthrough
CT: control target
= control target key end

     0   :  { %s444_s0 = inlined_call_operand.vmem [shape: f32[4,72,128], index: 0, kind: input, shape index: {}]   ;;  %s445_s1 = inlined_call_operand.vmem [shape: f32[72,128], index: 1, kind: input, shape index: {}]   ;;  %s446_s2 = inlined_call_operand.vmem [shape: f32[4,72,128], index: 2, kind: output, shape index: {}]  }
   0x1   :  { %v11_v0 = vld [vmem:[%s444_s0] sm:$0xff]  ;;  %v12_v2 = vld [vmem:[%s444_s0 + $0x8] sm:$0xff]  ;;  %v13_v5 = vld [vmem:[%s444_s0 + $0x10] sm:$0xff] }
   0x2   :  { %v153_v1 = vld [vmem:[%s445_s1] sm:$0xff]  ;;  %v162_v4 = vld [vmem:[%s445_s1 + $0x8] sm:$0xff]  ;;  %v170_v6 = vld [vmem:[%s445_s1 + $0x10] sm:$0xff] }
   0x3   :  { %v56_v3 = vadd.f32 %v153_v1, %v11_v0  ;;  %v57_v7 = vadd.f32 %v162_v4, %v12_v2  ;;  %v58_v8 = vadd.f32 %v170_v6, %v13_v5  ;;  %v14_v9 = vld [vmem:[%s444_s0 + $0x18] sm:$0xff]  ;;  %v15_v11 = vld [vmem:[%s444_s0 + $0x20] sm:$0xff]  ;;  %v16_v14 = vld [vmem:[%s444_s0 + $0x28] sm:$0xff] }
   0x4   :  { %v180_v10 = vld [vmem:[%s445_s1 + $0x18] sm:$0xff]  ;;  %v192_v13 = vld [vmem:[%s445_s1 + $0x20] sm:$0xff]  ;;  %v200_v15 = vld [vmem:[%s445_s1 + $0x28] sm:$0xff] }
   0x5   :  { %92 = vst [vmem:[%s446_s2] sm:$0xff] %v56_v3  ;;  %v59_v12 = vadd.f32 %v180_v10, %v14_v9  ;;  %93 = vst [vmem:[%s446_s2 + $0x8] sm:$0xff] %v57_v7  ;;  %v60_v16 = vadd.f32 %v192_v13, %v15_v11  ;;  %v61_v17 = vadd.f32 %v200_v15, %v16_v14  ;;  %v17_v18 = vld [vmem:[%s444_s0 + $0x30] sm:$0xff]  ;;  %v18_v20 = vld [vmem:[%s444_s0 + $0x38] sm:$0xff] }
   0x6   :  { %94 = vst [vmem:[%s446_s2 + $0x10] sm:$0xff] %v58_v8  ;;  %v216_v19 = vld [vmem:[%s445_s1 + $0x30] sm:$0xff]  ;;  %v228_v22 = vld [vmem:[%s445_s1 + $0x38] sm:$0xff]  ;;  %v19_v23 = vld [vmem:[%s444_s0 + $0x40] sm:$0xff] }
   0x7   :  { %95 = vst [vmem:[%s446_s2 + $0x18] sm:$0xff] %v59_v12  ;;  %v62_v21 = vadd.f32 %v216_v19, %v17_v18  ;;  %v236_v24 = vld [vmem:[%s445_s1 + $0x40] sm:$0xff]  ;;  %96 = vst [vmem:[%s446_s2 + $0x20] sm:$0xff] %v60_v16  ;;  %v63_v25 = vadd.f32 %v228_v22, %v18_v20  ;;  %v20_v27 = vld [vmem:[%s444_s0 + $0x48] sm:$0xff] }
   0x8   :  { %97 = vst [vmem:[%s446_s2 + $0x28] sm:$0xff] %v61_v17  ;;  %v64_v26 = vadd.f32 %v236_v24, %v19_v23  ;;  %v21_v28 = vld [vmem:[%s444_s0 + $0x50] sm:$0xff]  ;;  %v22_v29 = vld [vmem:[%s444_s0 + $0x58] sm:$0xff]  ;;  %v65_v30 = vadd.f32 %v153_v1, %v20_v27  ;;  %v23_v33 = vld [vmem:[%s444_s0 + $0x60] sm:$0xff] }
   0x9   :  { %98 = vst [vmem:[%s446_s2 + $0x30] sm:$0xff] %v62_v21  ;;  %v66_v31 = vadd.f32 %v162_v4, %v21_v28  ;;  %v67_v32 = vadd.f32 %v170_v6, %v22_v29  ;;  %v24_v34 = vld [vmem:[%s444_s0 + $0x68] sm:$0xff]  ;;  %v25_v35 = vld [vmem:[%s444_s0 + $0x70] sm:$0xff]  ;;  %99 = vst [vmem:[%s446_s2 + $0x38] sm:$0xff] %v63_v25  ;;  %v68_v36 = vadd.f32 %v180_v10, %v23_v33 }
   0xa   :  { %100 = vst [vmem:[%s446_s2 + $0x40] sm:$0xff] %v64_v26  ;;  %v69_v37 = vadd.f32 %v192_v13, %v24_v34  ;;  %v70_v38 = vadd.f32 %v200_v15, %v25_v35  ;;  %v26_v39 = vld [vmem:[%s444_s0 + $0x78] sm:$0xff]  ;;  %v27_v40 = vld [vmem:[%s444_s0 + $0x80] sm:$0xff]  ;;  %v28_v41 = vld [vmem:[%s444_s0 + $0x88] sm:$0xff] }
   0xb   :  { %101 = vst [vmem:[%s446_s2 + $0x48] sm:$0xff] %v65_v30  ;;  %102 = vst [vmem:[%s446_s2 + $0x50] sm:$0xff] %v66_v31  ;;  %v71_v42 = vadd.f32 %v216_v19, %v26_v39  ;;  %v72_v43 = vadd.f32 %v228_v22, %v27_v40  ;;  %v73_v44 = vadd.f32 %v236_v24, %v28_v41  ;;  %v29_v45 = vld [vmem:[%s444_s0 + $0x90] sm:$0xff]  ;;  %v30_v46 = vld [vmem:[%s444_s0 + $0x98] sm:$0xff] }
   0xc   :  { %103 = vst [vmem:[%s446_s2 + $0x58] sm:$0xff] %v67_v32  ;;  %v31_v47 = vld [vmem:[%s444_s0 + $0xa0] sm:$0xff]  ;;  %104 = vst [vmem:[%s446_s2 + $0x60] sm:$0xff] %v68_v36  ;;  %v74_v48 = vadd.f32 %v153_v1, %v29_v45  ;;  %v75_v49 = vadd.f32 %v162_v4, %v30_v46  ;;  %v32_v51 = vld [vmem:[%s444_s0 + $0xa8] sm:$0xff] }
   0xd   :  { %105 = vst [vmem:[%s446_s2 + $0x68] sm:$0xff] %v69_v37  ;;  %106 = vst [vmem:[%s446_s2 + $0x70] sm:$0xff] %v70_v38  ;;  %v76_v50 = vadd.f32 %v170_v6, %v31_v47  ;;  %v33_v52 = vld [vmem:[%s444_s0 + $0xb0] sm:$0xff]  ;;  %v34_v53 = vld [vmem:[%s444_s0 + $0xb8] sm:$0xff]  ;;  %v77_v54 = vadd.f32 %v180_v10, %v32_v51 }
   0xe   :  { %107 = vst [vmem:[%s446_s2 + $0x78] sm:$0xff] %v71_v42  ;;  %108 = vst [vmem:[%s446_s2 + $0x80] sm:$0xff] %v72_v43  ;;  %v78_v55 = vadd.f32 %v192_v13, %v33_v52  ;;  %v79_v56 = vadd.f32 %v200_v15, %v34_v53  ;;  %v35_v57 = vld [vmem:[%s444_s0 + $0xc0] sm:$0xff]  ;;  %v36_v58 = vld [vmem:[%s444_s0 + $0xc8] sm:$0xff] }
   0xf   :  { %109 = vst [vmem:[%s446_s2 + $0x88] sm:$0xff] %v73_v44  ;;  %v37_v59 = vld [vmem:[%s444_s0 + $0xd0] sm:$0xff]  ;;  %110 = vst [vmem:[%s446_s2 + $0x90] sm:$0xff] %v74_v48  ;;  %v80_v60 = vadd.f32 %v216_v19, %v35_v57  ;;  %v81_v61 = vadd.f32 %v228_v22, %v36_v58  ;;  %v38_v63 = vld [vmem:[%s444_s0 + $0xd8] sm:$0xff] }
  0x10   :  { %111 = vst [vmem:[%s446_s2 + $0x98] sm:$0xff] %v75_v49  ;;  %112 = vst [vmem:[%s446_s2 + $0xa0] sm:$0xff] %v76_v50  ;;  %v82_v62 = vadd.f32 %v236_v24, %v37_v59  ;;  %v39_v0 = vld [vmem:[%s444_s0 + $0xe0] sm:$0xff]  ;;  %v40_v2 = vld [vmem:[%s444_s0 + $0xe8] sm:$0xff]  ;;  %v83_v3 = vadd.f32 %v153_v1, %v38_v63 }
  0x11   :  { %113 = vst [vmem:[%s446_s2 + $0xa8] sm:$0xff] %v77_v54  ;;  %114 = vst [vmem:[%s446_s2 + $0xb0] sm:$0xff] %v78_v55  ;;  %v84_v5 = vadd.f32 %v162_v4, %v39_v0  ;;  %v85_v7 = vadd.f32 %v170_v6, %v40_v2  ;;  %v41_v8 = vld [vmem:[%s444_s0 + $0xf0] sm:$0xff]  ;;  %v42_v9 = vld [vmem:[%s444_s0 + $0xf8] sm:$0xff] }
  0x12   :  { %115 = vst [vmem:[%s446_s2 + $0xb8] sm:$0xff] %v79_v56  ;;  %v43_v11 = vld [vmem:[%s444_s0 + $0x100] sm:$0xff]  ;;  %116 = vst [vmem:[%s446_s2 + $0xc0] sm:$0xff] %v80_v60  ;;  %v86_v1 = vadd.f32 %v180_v10, %v41_v8  ;;  %v87_v4 = vadd.f32 %v192_v13, %v42_v9  ;;  %v44_v12 = vld [vmem:[%s444_s0 + $0x108] sm:$0xff] }
  0x13   :  { %117 = vst [vmem:[%s446_s2 + $0xc8] sm:$0xff] %v81_v61  ;;  %118 = vst [vmem:[%s446_s2 + $0xd0] sm:$0xff] %v82_v62  ;;  %v88_v6 = vadd.f32 %v200_v15, %v43_v11  ;;  %v45_v14 = vld [vmem:[%s444_s0 + $0x110] sm:$0xff]  ;;  %v46_v16 = vld [vmem:[%s444_s0 + $0x118] sm:$0xff]  ;;  %v89_v10 = vadd.f32 %v216_v19, %v44_v12 }
  0x14   :  { %119 = vst [vmem:[%s446_s2 + $0xd8] sm:$0xff] %v83_v3  ;;  %120 = vst [vmem:[%s446_s2 + $0xe0] sm:$0xff] %v84_v5  ;;  %v90_v13 = vadd.f32 %v228_v22, %v45_v14  ;;  %v91_v15 = vadd.f32 %v236_v24, %v46_v16 }
  0x15   :  { %121 = vst [vmem:[%s446_s2 + $0xe8] sm:$0xff] %v85_v7  ;;  %122 = vst [vmem:[%s446_s2 + $0xf0] sm:$0xff] %v86_v1 }
  0x16   :  { %123 = vst [vmem:[%s446_s2 + $0xf8] sm:$0xff] %v87_v4  ;;  %124 = vst [vmem:[%s446_s2 + $0x100] sm:$0xff] %v88_v6 }
  0x17   :  { %125 = vst [vmem:[%s446_s2 + $0x108] sm:$0xff] %v89_v10  ;;  %126 = vst [vmem:[%s446_s2 + $0x110] sm:$0xff] %v90_v13 }
  0x18   :  { %127 = vst [vmem:[%s446_s2 + $0x118] sm:$0xff] %v91_v15 }

</bundles_post_ra>
